<compile_context>
chip_gen: v7x
topology: tpu7x:2x2x1
jax: 0.10.0
libtpu: 0.0.40
codegen_flags: <defaults>
</compile_context>

<pallas_src>
import math
import functools

import jax
import jax.numpy as jnp
from jax.experimental import pallas as pl
from jax.experimental.pallas import tpu as pltpu


def _derive_vmem_limit():
    """Per-chip scoped-VMEM budget: ~75% of physical VMEM, capped at 100 MB.

    v7x has only 64 MiB / TensorCore -> ~48 MB; v5e/v6e (128 MiB) -> ~96 MB.
    """
    cap = 64 * 1024 * 1024
    try:
        info = pltpu.get_tpu_info()
        cap = int(getattr(info, "vmem_capacity_bytes", cap))
    except Exception:
        pass
    return int(min(cap * 3 // 4, 100 * 1024 * 1024))


VMEM_LIMIT = _derive_vmem_limit()


def _tile(dim, target):
    """Largest tile <= target that evenly divides dim (full dim if dim <= target)."""
    if dim <= target:
        return dim
    t = target
    while t >= 8:
        if dim % t == 0:
            return t
        t //= 2
    return dim


def _heads_per_block(n_heads, seq, budget_bytes=4 << 20):
    """Heads per attention grid step: largest divisor whose f32 score tile fits."""
    best = 1
    for d in range(1, n_heads + 1):
        if n_heads % d == 0 and d * seq * seq * 4 <= budget_bytes:
            best = d
    return best


def _weight_stream_spec(block_shape, index_map, depth=3):
    """Deeper multi-buffering for zero-reuse weight streams (graceful fallback)."""
    try:
        return pl.BlockSpec(block_shape, index_map, pipeline_mode=pl.Buffered(depth))
    except Exception:
        return pl.BlockSpec(block_shape, index_map)


# ----------------------------- Pallas kernels -----------------------------

def _emb_ln_kernel(w_ref, p_ref, t_ref, g_ref, b_ref, o_ref):
    # word + position + token-type embeddings fused with LayerNorm (f32 math).
    h = (w_ref[0].astype(jnp.float32) + p_ref[...].astype(jnp.float32)
         + t_ref[...].astype(jnp.float32))
    mu = jnp.mean(h, axis=-1, keepdims=True)
    var = jnp.mean((h - mu) ** 2, axis=-1, keepdims=True)
    y = (h - mu) * jax.lax.rsqrt(var + 1e-12) * g_ref[...] + b_ref[...]
    o_ref[0] = y.astype(o_ref.dtype)


def _matmul_kernel(x_ref, w_ref, b_ref, o_ref, acc_ref, *, activation):
    # grid = (M//tm, N//tn, K//tk); K axis (last) is the reduction.
    @pl.when(pl.program_id(2) == 0)
    def _():
        acc_ref[...] = jnp.zeros_like(acc_ref)

    acc_ref[...] += jnp.dot(x_ref[...], w_ref[...],
                            preferred_element_type=jnp.float32)

    @pl.when(pl.program_id(2) == pl.num_programs(2) - 1)
    def _():
        h = acc_ref[...] + b_ref[...]
        if activation == "gelu":
            # exact erf-GELU (matches HF BERT); erf is a single EUP op
            h = 0.5 * h * (1.0 + jax.lax.erf(h * (1.0 / math.sqrt(2.0))))
        o_ref[...] = h.astype(o_ref.dtype)


def _matmul_res_ln_kernel(x_ref, w_ref, b_ref, r_ref, g_ref, bt_ref, o_ref, acc_ref):
    # grid = (M//tm, K//tk); N = full hidden so the LayerNorm epilogue sees whole rows.
    @pl.when(pl.program_id(1) == 0)
    def _():
        acc_ref[...] = jnp.zeros_like(acc_ref)

    acc_ref[...] += jnp.dot(x_ref[...], w_ref[...],
                            preferred_element_type=jnp.float32)

    @pl.when(pl.program_id(1) == pl.num_programs(1) - 1)
    def _():
        h = acc_ref[...] + b_ref[...] + r_ref[...].astype(jnp.float32)
        mu = jnp.mean(h, axis=-1, keepdims=True)
        var = jnp.mean((h - mu) ** 2, axis=-1, keepdims=True)
        y = (h - mu) * jax.lax.rsqrt(var + 1e-12) * g_ref[...] + bt_ref[...]
        o_ref[...] = y.astype(o_ref.dtype)


def _attention_kernel(q_ref, k_ref, v_ref, mb_ref, o_ref, *, scale, hb, dh):
    # q/k/v blocks are (S, hb*dh) column slices taken straight out of the fused
    # QKV matmul output; the output block is the matching (S, hb*dh) slice of
    # the (B*S, H) context, so the HBM DMA on both sides is lane-dense.
    bias = mb_ref[0]                          # (1, S) additive mask bias, f32
    for i in range(hb):                       # small static unroll over heads
        sl = pl.ds(i * dh, dh)
        q = q_ref[:, sl] * scale              # fold 1/sqrt(dh) into q (S*dh muls)
        k = k_ref[:, sl]
        v = v_ref[:, sl]
        # contract over the last dims -> no transpose feeding the MXU
        s = jax.lax.dot_general(q, k, (((1,), (1,)), ((), ())),
                                preferred_element_type=jnp.float32)   # (S, S)
        s = s + bias
        m = jnp.max(s, axis=-1, keepdims=True)
        p = jnp.exp(s - m)
        l = jnp.sum(p, axis=-1, keepdims=True)
        ctx = jnp.dot(p.astype(v.dtype), v,
                      preferred_element_type=jnp.float32)             # (S, dh)
        # normalize the small (S, dh) output, not the (S, S) scores; EUP reciprocal
        # (approx=True -> ~1e-3 rel. err., below bf16 activation precision)
        o_ref[:, sl] = (ctx * pl.reciprocal(l, approx=True)).astype(o_ref.dtype)


def _head_logits_lse_kernel(x_ref, w_ref, b_ref, logit_ref, lse_ref,
                            acc_ref, m_scr, s_scr):
    # grid = (M//tm, V//tv, K//tk).  Streams bf16 logits to HBM and keeps a
    # per-row online (max, sum-exp) so the follow-up normalize pass is cheap.
    v_idx = pl.program_id(1)
    k_idx = pl.program_id(2)

    @pl.when(jnp.logical_and(v_idx == 0, k_idx == 0))
    def _():
        m_scr[...] = jnp.full_like(m_scr, -jnp.inf)
        s_scr[...] = jnp.zeros_like(s_scr)

    @pl.when(k_idx == 0)
    def _():
        acc_ref[...] = jnp.zeros_like(acc_ref)

    acc_ref[...] += jnp.dot(x_ref[...], w_ref[...],
                            preferred_element_type=jnp.float32)

    @pl.when(k_idx == pl.num_programs(2) - 1)
    def _():
        logits = acc_ref[...] + b_ref[...]                     # (tm, tv) f32
        logit_ref[...] = logits.astype(logit_ref.dtype)        # bf16 logits out
        bmax = jnp.max(logits, axis=-1, keepdims=True)
        new_m = jnp.maximum(m_scr[...], bmax)
        s_scr[...] = (s_scr[...] * jnp.exp(m_scr[...] - new_m)
                      + jnp.sum(jnp.exp(logits - new_m), axis=-1, keepdims=True))
        m_scr[...] = new_m

    @pl.when(jnp.logical_and(k_idx == pl.num_programs(2) - 1,
                             v_idx == pl.num_programs(1) - 1))
    def _():
        lse_ref[...] = m_scr[...] + jnp.log(s_scr[...])


def _softmax_normalize_kernel(logit_ref, lse_ref, o_ref):
    # probs = exp(logit - logsumexp); bf16 output halves the largest HBM write.
    o_ref[...] = jnp.exp(logit_ref[...].astype(jnp.float32)
                         - lse_ref[...]).astype(o_ref.dtype)


def _head_ce_kernel(x_ref, w_ref, b_ref, y_ref, nll_ref, cnt_ref,
                    acc_ref, m_scr, s_scr, pick_scr, *, tv):
    # grid = (M//tm, V//tv, K//tk).  Online logsumexp over V tiles; logits
    # never leave VMEM.  CrossEntropy(ignore_index=-1) per-row stats.
    v_idx = pl.program_id(1)
    k_idx = pl.program_id(2)

    @pl.when(jnp.logical_and(v_idx == 0, k_idx == 0))
    def _():
        m_scr[...] = jnp.full_like(m_scr, -jnp.inf)
        s_scr[...] = jnp.zeros_like(s_scr)
        pick_scr[...] = jnp.zeros_like(pick_scr)

    @pl.when(k_idx == 0)
    def _():
        acc_ref[...] = jnp.zeros_like(acc_ref)

    acc_ref[...] += jnp.dot(x_ref[...], w_ref[...],
                            preferred_element_type=jnp.float32)

    @pl.when(k_idx == pl.num_programs(2) - 1)
    def _():
        logits = acc_ref[...] + b_ref[...]                     # (tm, tv) f32
        labels = y_ref[...]                                    # (tm, 1) i32
        cols = (jax.lax.broadcasted_iota(jnp.int32, logits.shape, 1)
                + v_idx * tv)                                  # global vocab ids
        bmax = jnp.max(logits, axis=-1, keepdims=True)
        new_m = jnp.maximum(m_scr[...], bmax)
        s_scr[...] = (s_scr[...] * jnp.exp(m_scr[...] - new_m)
                      + jnp.sum(jnp.exp(logits - new_m), axis=-1, keepdims=True))
        m_scr[...] = new_m
        pick_scr[...] += jnp.sum(jnp.where(cols == labels, logits, 0.0),
                                 axis=-1, keepdims=True)

    @pl.when(jnp.logical_and(k_idx == pl.num_programs(2) - 1,
                             v_idx == pl.num_programs(1) - 1))
    def _():
        lse = m_scr[...] + jnp.log(s_scr[...])
        valid = (y_ref[...] != -1).astype(jnp.float32)
        nll_ref[...] = (lse - pick_scr[...]) * valid
        cnt_ref[...] = valid


# ----------------------------- Pallas wrappers -----------------------------

def pallas_embed_layernorm(word_gathered, pos_emb, type_row, gamma, beta,
                           out_dtype=jnp.bfloat16):
    B, S, H = word_gathered.shape
    ts = _tile(S, 256)
    out = pl.pallas_call(
        _emb_ln_kernel,
        out_shape=jax.ShapeDtypeStruct((B, S, H), out_dtype),
        grid=(B, S // ts),
        in_specs=[pl.BlockSpec((1, ts, H), lambda b, s: (b, s, 0)),
                  pl.BlockSpec((ts, H), lambda b, s: (s, 0)),
                  pl.BlockSpec((1, H), lambda b, s: (0, 0)),
                  pl.BlockSpec((1, H), lambda b, s: (0, 0)),
                  pl.BlockSpec((1, H), lambda b, s: (0, 0))],
        out_specs=pl.BlockSpec((1, ts, H), lambda b, s: (b, s, 0)),
        compiler_params=pltpu.CompilerParams(
            dimension_semantics=("parallel", "parallel"),
            vmem_limit_bytes=VMEM_LIMIT),
    )(word_gathered, pos_emb[:S], type_row.reshape(1, H),
      gamma.reshape(1, H), beta.reshape(1, H))
    return out.reshape(B * S, H)


def pallas_matmul(x, w, b, activation=None, out_dtype=jnp.bfloat16):
    M, K = x.shape
    N = w.shape[1]
    # big tiles: per-step overhead (~0.35 us) and operand re-reads amortized;
    # at bert-base (tm,tn,tk)=(512,512,768/1024) stays < ~9 MB VMEM (fits v7x).
    tm, tn, tk = _tile(M, 512), _tile(N, 512), _tile(K, 1024)
    kern = functools.partial(_matmul_kernel, activation=activation)
    return pl.pallas_call(
        kern,
        out_shape=jax.ShapeDtypeStruct((M, N), out_dtype),
        grid=(M // tm, N // tn, K // tk),
        in_specs=[pl.BlockSpec((tm, tk), lambda m, n, k: (m, k)),
                  pl.BlockSpec((tk, tn), lambda m, n, k: (k, n)),
                  pl.BlockSpec((1, tn), lambda m, n, k: (0, n))],
        out_specs=pl.BlockSpec((tm, tn), lambda m, n, k: (m, n)),
        scratch_shapes=[pltpu.VMEM((tm, tn), jnp.float32)],
        compiler_params=pltpu.CompilerParams(
            dimension_semantics=("parallel", "parallel", "arbitrary"),
            vmem_limit_bytes=VMEM_LIMIT),
    )(x, w, b.reshape(1, N))


def pallas_matmul_res_layernorm(x, w, b, residual, gamma, beta,
                                out_dtype=jnp.bfloat16):
    M, K = x.shape
    H = w.shape[1]
    tm, tk = _tile(M, 512), _tile(K, 1024)
    return pl.pallas_call(
        _matmul_res_ln_kernel,
        out_shape=jax.ShapeDtypeStruct((M, H), out_dtype),
        grid=(M // tm, K // tk),
        in_specs=[pl.BlockSpec((tm, tk), lambda m, k: (m, k)),
                  pl.BlockSpec((tk, H), lambda m, k: (k, 0)),
                  pl.BlockSpec((1, H), lambda m, k: (0, 0)),
                  pl.BlockSpec((tm, H), lambda m, k: (m, 0)),
                  pl.BlockSpec((1, H), lambda m, k: (0, 0)),
                  pl.BlockSpec((1, H), lambda m, k: (0, 0))],
        out_specs=pl.BlockSpec((tm, H), lambda m, k: (m, 0)),
        scratch_shapes=[pltpu.VMEM((tm, H), jnp.float32)],
        compiler_params=pltpu.CompilerParams(
            dimension_semantics=("parallel", "arbitrary"),
            vmem_limit_bytes=VMEM_LIMIT),
    )(x, w, b.reshape(1, H), residual, gamma.reshape(1, H), beta.reshape(1, H))


def pallas_attention_from_qkv(qkv, bias, B, S, n_heads, dh, out_dtype=jnp.bfloat16):
    """Self-attention reading head columns straight from the fused (B*S, 3H) QKV.

    No XLA split/transpose glue: the index_map slices q/k/v column blocks and the
    output block (S, hb*dh) lands directly in the (B*S, H) layout the output
    projection consumes.  Grid (B, n_head_blocks) keeps >=2 parallel blocks for
    v7x's two TensorCores whenever B >= 2 or n_heads > hb.
    """
    H = n_heads * dh
    hb = _heads_per_block(n_heads, S)
    nhb = n_heads // hb
    kern = functools.partial(_attention_kernel,
                             scale=1.0 / math.sqrt(dh), hb=hb, dh=dh)
    return pl.pallas_call(
        kern,
        out_shape=jax.ShapeDtypeStruct((B * S, H), out_dtype),
        grid=(B, nhb),
        in_specs=[pl.BlockSpec((S, hb * dh), lambda b, h: (b, h)),
                  pl.BlockSpec((S, hb * dh), lambda b, h: (b, nhb + h)),
                  pl.BlockSpec((S, hb * dh), lambda b, h: (b, 2 * nhb + h)),
                  pl.BlockSpec((1, 1, S), lambda b, h: (b, 0, 0))],
        out_specs=pl.BlockSpec((S, hb * dh), lambda b, h: (b, h)),
        compiler_params=pltpu.CompilerParams(
            dimension_semantics=("parallel", "parallel"),
            vmem_limit_bytes=VMEM_LIMIT),
    )(qkv, qkv, qkv, bias)


def pallas_head_softmax(x, w, b, out_dtype=jnp.bfloat16):
    # V-tiled classifier matmul streaming bf16 logits + per-row logsumexp,
    # followed by a cheap elementwise normalize.  Full-V blocks never touch VMEM.
    # TODO(synk): pad V to a tile multiple for vocabularies (e.g. 21128) that
    # have no friendly divisor; synthetic vocab here divides evenly.
    M, K = x.shape
    V = w.shape[1]
    tm, tv, tk = _tile(M, 512), _tile(V, 2048), _tile(K, 1024)
    logits, lse = pl.pallas_call(
        _head_logits_lse_kernel,
        out_shape=(jax.ShapeDtypeStruct((M, V), jnp.bfloat16),
                   jax.ShapeDtypeStruct((M, 1), jnp.float32)),
        grid=(M // tm, V // tv, K // tk),
        in_specs=[pl.BlockSpec((tm, tk), lambda m, v, k: (m, k)),
                  _weight_stream_spec((tk, tv), lambda m, v, k: (k, v)),
                  pl.BlockSpec((1, tv), lambda m, v, k: (0, v))],
        out_specs=(pl.BlockSpec((tm, tv), lambda m, v, k: (m, v)),
                   pl.BlockSpec((tm, 1), lambda m, v, k: (m, 0))),
        scratch_shapes=[pltpu.VMEM((tm, tv), jnp.float32),
                        pltpu.VMEM((tm, 1), jnp.float32),
                        pltpu.VMEM((tm, 1), jnp.float32)],
        compiler_params=pltpu.CompilerParams(
            dimension_semantics=("parallel", "arbitrary", "arbitrary"),
            vmem_limit_bytes=VMEM_LIMIT),
    )(x, w, b.reshape(1, V))

    probs = pl.pallas_call(
        _softmax_normalize_kernel,
        out_shape=jax.ShapeDtypeStruct((M, V), out_dtype),
        grid=(M // tm, V // tv),
        in_specs=[pl.BlockSpec((tm, tv), lambda m, v: (m, v)),
                  pl.BlockSpec((tm, 1), lambda m, v: (m, 0))],
        out_specs=pl.BlockSpec((tm, tv), lambda m, v: (m, v)),
        compiler_params=pltpu.CompilerParams(
            dimension_semantics=("parallel", "parallel"),
            vmem_limit_bytes=VMEM_LIMIT),
    )(logits, lse)
    return probs


def pallas_head_ce(x, w, b, labels):
    # V-tiled classifier matmul fused with CrossEntropy(ignore_index=-1):
    # per-row online logsumexp + picked-logit; logits never written to HBM.
    M, K = x.shape
    V = w.shape[1]
    tm, tv, tk = _tile(M, 512), _tile(V, 2048), _tile(K, 1024)
    kern = functools.partial(_head_ce_kernel, tv=tv)
    nll, cnt = pl.pallas_call(
        kern,
        out_shape=(jax.ShapeDtypeStruct((M, 1), jnp.float32),
                   jax.ShapeDtypeStruct((M, 1), jnp.float32)),
        grid=(M // tm, V // tv, K // tk),
        in_specs=[pl.BlockSpec((tm, tk), lambda m, v, k: (m, k)),
                  _weight_stream_spec((tk, tv), lambda m, v, k: (k, v)),
                  pl.BlockSpec((1, tv), lambda m, v, k: (0, v)),
                  pl.BlockSpec((tm, 1), lambda m, v, k: (m, 0))],
        out_specs=(pl.BlockSpec((tm, 1), lambda m, v, k: (m, 0)),
                   pl.BlockSpec((tm, 1), lambda m, v, k: (m, 0))),
        scratch_shapes=[pltpu.VMEM((tm, tv), jnp.float32),
                        pltpu.VMEM((tm, 1), jnp.float32),
                        pltpu.VMEM((tm, 1), jnp.float32),
                        pltpu.VMEM((tm, 1), jnp.float32)],
        compiler_params=pltpu.CompilerParams(
            dimension_semantics=("parallel", "arbitrary", "arbitrary"),
            vmem_limit_bytes=VMEM_LIMIT),
    )(x, w, b.reshape(1, V), labels.reshape(M, 1).astype(jnp.int32))
    total = jnp.sum(nll)
    count = jnp.sum(cnt)
    # TODO(synk): PyTorch returns NaN when every label == ignore_index; guarded here.
    return total / jnp.maximum(count, 1.0)


# ----------------------------- model -----------------------------

def init_params(key, vocab_size, hidden, n_layers, n_heads, intermediate, max_pos):
    keys = jax.random.split(key, 4 + n_layers)

    def normal(k, shape, dtype=jnp.float32):
        return (jax.random.normal(k, shape, jnp.float32) * 0.02).astype(dtype)

    params = {
        "hidden": hidden,
        "n_heads": n_heads,
        # embedding tables in bf16 to halve gather traffic; LN math stays f32
        "word_emb": normal(keys[0], (vocab_size, hidden), jnp.bfloat16),
        "pos_emb": normal(keys[1], (max_pos, hidden), jnp.bfloat16),
        "type_emb": normal(keys[2], (2, hidden), jnp.bfloat16),
        "emb_ln_g": jnp.ones((hidden,), jnp.float32),
        "emb_ln_b": jnp.zeros((hidden,), jnp.float32),
        "cls_w": normal(keys[3], (hidden, vocab_size), jnp.bfloat16),
        "cls_b": jnp.zeros((vocab_size,), jnp.float32),
        "layers": [],
    }
    for li in range(n_layers):
        lk = jax.random.split(keys[4 + li], 6)
        wq = normal(lk[0], (hidden, hidden), jnp.bfloat16)
        wk = normal(lk[1], (hidden, hidden), jnp.bfloat16)
        wv = normal(lk[2], (hidden, hidden), jnp.bfloat16)
        params["layers"].append({
            # fused QKV projection weight (H, 3H)
            "wqkv": jnp.concatenate([wq, wk, wv], axis=1),
            "bqkv": jnp.zeros((3 * hidden,), jnp.float32),
            "wo": normal(lk[3], (hidden, hidden), jnp.bfloat16),
            "bo": jnp.zeros((hidden,), jnp.float32),
            "ln1_g": jnp.ones((hidden,), jnp.float32),
            "ln1_b": jnp.zeros((hidden,), jnp.float32),
            "w1": normal(lk[4], (hidden, intermediate), jnp.bfloat16),
            "b1": jnp.zeros((intermediate,), jnp.float32),
            "w2": normal(lk[5], (intermediate, hidden), jnp.bfloat16),
            "b2": jnp.zeros((hidden,), jnp.float32),
            "ln2_g": jnp.ones((hidden,), jnp.float32),
            "ln2_b": jnp.zeros((hidden,), jnp.float32),
        })
    return params


def language_model_forward(params, x, mask=None, y=None):
    B, S = x.shape
    H = params["hidden"]
    nH = params["n_heads"]
    dh = H // nH

    # --- embeddings: gather is XLA glue; pos/type add + LayerNorm fused kernel ---
    word = params["word_emb"][x]                             # (B, S, H) bf16
    h2 = pallas_embed_layernorm(word, params["pos_emb"], params["type_emb"][0],
                                params["emb_ln_g"], params["emb_ln_b"])  # (B*S, H)

    # --- attention mask -> additive bias, shared across heads via the index_map ---
    if mask is None:
        mask = jnp.ones((B, S), jnp.float32)
    bias = ((1.0 - mask.astype(jnp.float32)) * -10000.0).reshape(B, 1, S)

    # --- encoder layers ---
    for layer in params["layers"]:
        qkv = pallas_matmul(h2, layer["wqkv"], layer["bqkv"])          # (B*S, 3H)
        ctx = pallas_attention_from_qkv(qkv, bias, B, S, nH, dh)       # (B*S, H)
        # attention output projection + residual + LayerNorm fused
        h2 = pallas_matmul_res_layernorm(ctx, layer["wo"], layer["bo"],
                                         h2, layer["ln1_g"], layer["ln1_b"])
        # FFN: erf-GELU fused into w1 matmul, residual+LN fused into w2 matmul
        ffn = pallas_matmul(h2, layer["w1"], layer["b1"], activation="gelu")
        h2 = pallas_matmul_res_layernorm(ffn, layer["w2"], layer["b2"],
                                         h2, layer["ln2_g"], layer["ln2_b"])

    # --- classification head fused with CE loss / softmax ---
    if y is not None:
        return pallas_head_ce(h2, params["cls_w"], params["cls_b"], y.reshape(-1))
    probs = pallas_head_softmax(h2, params["cls_w"], params["cls_b"])
    return probs.reshape(B, S, -1)


# ----------------------------- main -----------------------------

if __name__ == "__main__":
    # small, lane-friendly shapes (H multiple of 128 so attention/head blocks are
    # lane-dense even at toy size)
    vocab_size = 64
    hidden = 128
    n_layers = 2
    n_heads = 2
    intermediate = 256
    B, S = 2, 8

    root = jax.random.PRNGKey(0)
    kp, kx, ky = jax.random.split(root, 3)

    params = init_params(kp, vocab_size, hidden, n_layers, n_heads,
                         intermediate, max_pos=16)

    x = jax.random.randint(kx, (B, S), 0, vocab_size, jnp.int32)
    mask = jnp.ones((B, S), jnp.float32)
    # labels include -1 (ignore_index) positions
    y = jax.random.randint(ky, (B, S), -1, vocab_size, jnp.int32)

    probs = language_model_forward(params, x, mask=mask)        # softmax path
    loss = language_model_forward(params, x, mask=mask, y=y)    # CE-loss path
    jax.block_until_ready((probs, loss))

    assert probs.shape == (B, S, vocab_size)
    assert bool(jnp.all(jnp.isfinite(probs.astype(jnp.float32))))
    assert bool(jnp.isfinite(loss))
    # softmax rows sum to 1 (probs are bf16, so tolerance reflects bf16 rounding)
    row_sums = jnp.sum(probs.astype(jnp.float32), axis=-1)
    assert bool(jnp.allclose(row_sums, 1.0, atol=1e-2))

    print("KERNEL_OK")
</pallas_src>

<mosaic_0001>
module attributes {stable_mosaic.version = 11 : i64} {
  func.func @_emb_ln_kernel(%arg0: i32, %arg1: i32, %arg2: memref<1x8x128xbf16, #tpu.memory_space<vmem>>, %arg3: memref<8x128xbf16, #tpu.memory_space<vmem>>, %arg4: memref<1x128xbf16, #tpu.memory_space<vmem>>, %arg5: memref<1x128xf32, #tpu.memory_space<vmem>>, %arg6: memref<1x128xf32, #tpu.memory_space<vmem>>, %arg7: memref<1x8x128xbf16, #tpu.memory_space<vmem>>) attributes {dimension_semantics = [#tpu.dimension_semantics<parallel>, #tpu.dimension_semantics<parallel>], iteration_bounds = array<i64: 2, 1>, scalar_prefetch = 0 : i64, scratch_operands = 0 : i64, tpu.core_type = #tpu.core_type<tc>, window_params = [{transform_indices = @transform_0, window_bounds = array<i64: 1, 8, 128>}, {transform_indices = @transform_1, window_bounds = array<i64: 8, 128>}, {pipeline_mode = #tpu.pipeline_mode<synchronous>, transform_indices = @transform_2, window_bounds = array<i64: 1, 128>}, {pipeline_mode = #tpu.pipeline_mode<synchronous>, transform_indices = @transform_3, window_bounds = array<i64: 1, 128>}, {pipeline_mode = #tpu.pipeline_mode<synchronous>, transform_indices = @transform_4, window_bounds = array<i64: 1, 128>}, {transform_indices = @transform_5, window_bounds = array<i64: 1, 8, 128>}]} {
    %c0 = arith.constant 0 : index
    %c0_0 = arith.constant 0 : index
    %c0_1 = arith.constant 0 : index
    %0 = vector.load %arg2[%c0, %c0_0, %c0_1] : memref<1x8x128xbf16, #tpu.memory_space<vmem>>, vector<1x8x128xbf16>
    %1 = vector.shape_cast %0 : vector<1x8x128xbf16> to vector<8x128xbf16>
    %2 = arith.extf %1 : vector<8x128xbf16> to vector<8x128xf32>
    %c0_2 = arith.constant 0 : index
    %c0_3 = arith.constant 0 : index
    %3 = vector.load %arg3[%c0_2, %c0_3] : memref<8x128xbf16, #tpu.memory_space<vmem>>, vector<8x128xbf16>
    %4 = arith.extf %3 : vector<8x128xbf16> to vector<8x128xf32>
    %5 = arith.addf %2, %4 : vector<8x128xf32>
    %c0_4 = arith.constant 0 : index
    %c0_5 = arith.constant 0 : index
    %6 = vector.load %arg4[%c0_4, %c0_5] : memref<1x128xbf16, #tpu.memory_space<vmem>>, vector<1x128xbf16>
    %7 = arith.extf %6 : vector<1x128xbf16> to vector<1x128xf32>
    %8 = vector.broadcast %7 : vector<1x128xf32> to vector<8x128xf32>
    %9 = arith.addf %5, %8 : vector<8x128xf32>
    %cst = arith.constant dense<0.000000e+00> : vector<8xf32>
    %10 = vector.multi_reduction <add>, %9, %cst [1] : vector<8x128xf32> to vector<8xf32>
    %11 = vector.shape_cast %10 : vector<8xf32> to vector<8x1xf32>
    %cst_6 = arith.constant 1.280000e+02 : f32
    %12 = vector.broadcast %cst_6 : f32 to vector<8x1xf32>
    %13 = arith.divf %11, %12 : vector<8x1xf32>
    %14 = vector.broadcast %13 : vector<8x1xf32> to vector<8x128xf32>
    %15 = arith.subf %9, %14 : vector<8x128xf32>
    %16 = arith.mulf %15, %15 : vector<8x128xf32>
    %cst_7 = arith.constant dense<0.000000e+00> : vector<8xf32>
    %17 = vector.multi_reduction <add>, %16, %cst_7 [1] : vector<8x128xf32> to vector<8xf32>
    %18 = vector.shape_cast %17 : vector<8xf32> to vector<8x1xf32>
    %cst_8 = arith.constant 1.280000e+02 : f32
    %19 = vector.broadcast %cst_8 : f32 to vector<8x1xf32>
    %20 = arith.divf %18, %19 : vector<8x1xf32>
    %21 = vector.broadcast %13 : vector<8x1xf32> to vector<8x128xf32>
    %22 = arith.subf %9, %21 : vector<8x128xf32>
    %cst_9 = arith.constant 9.99999996E-13 : f32
    %23 = vector.broadcast %cst_9 : f32 to vector<8x1xf32>
    %24 = arith.addf %20, %23 : vector<8x1xf32>
    %25 = math.rsqrt %24 : vector<8x1xf32>
    %26 = vector.broadcast %25 : vector<8x1xf32> to vector<8x128xf32>
    %27 = arith.mulf %22, %26 : vector<8x128xf32>
    %c0_10 = arith.constant 0 : index
    %c0_11 = arith.constant 0 : index
    %28 = vector.load %arg5[%c0_10, %c0_11] : memref<1x128xf32, #tpu.memory_space<vmem>>, vector<1x128xf32>
    %29 = vector.broadcast %28 : vector<1x128xf32> to vector<8x128xf32>
    %30 = arith.mulf %27, %29 : vector<8x128xf32>
    %c0_12 = arith.constant 0 : index
    %c0_13 = arith.constant 0 : index
    %31 = vector.load %arg6[%c0_12, %c0_13] : memref<1x128xf32, #tpu.memory_space<vmem>>, vector<1x128xf32>
    %32 = vector.broadcast %31 : vector<1x128xf32> to vector<8x128xf32>
    %33 = arith.addf %30, %32 : vector<8x128xf32>
    %34 = arith.truncf %33 : vector<8x128xf32> to vector<8x128xbf16>
    %c0_14 = arith.constant 0 : index
    %c0_15 = arith.constant 0 : index
    %c0_16 = arith.constant 0 : index
    %35 = vector.load %arg7[%c0_14, %c0_15, %c0_16] : memref<1x8x128xbf16, #tpu.memory_space<vmem>>, vector<1x8x128xbf16>
    %36 = vector.shape_cast %35 : vector<1x8x128xbf16> to vector<8x128xbf16>
    %37 = vector.shape_cast %34 : vector<8x128xbf16> to vector<1x8x128xbf16>
    tpu.vector_store %arg7[%c0_14, %c0_15, %c0_16], %37 {strides = array<i32>} : memref<1x8x128xbf16, #tpu.memory_space<vmem>>, vector<1x8x128xbf16>,
    return
  }
  func.func @transform_0(%arg0: i32, %arg1: i32) -> (i32, i32, i32) {
    %c0_i32 = arith.constant 0 : i32
    %c0_i32_0 = arith.constant 0 : i32
    return %arg0, %arg1, %c0_i32 : i32, i32, i32
  }
  func.func @transform_1(%arg0: i32, %arg1: i32) -> (i32, i32) {
    %c0_i32 = arith.constant 0 : i32
    %c0_i32_0 = arith.constant 0 : i32
    return %arg1, %c0_i32 : i32, i32
  }
  func.func @transform_2(%arg0: i32, %arg1: i32) -> (i32, i32) {
    %c0_i32 = arith.constant 0 : i32
    %c0_i32_0 = arith.constant 0 : i32
    %c0_i32_1 = arith.constant 0 : i32
    return %c0_i32, %c0_i32_0 : i32, i32
  }
  func.func @transform_3(%arg0: i32, %arg1: i32) -> (i32, i32) {
    %c0_i32 = arith.constant 0 : i32
    %c0_i32_0 = arith.constant 0 : i32
    %c0_i32_1 = arith.constant 0 : i32
    return %c0_i32, %c0_i32_0 : i32, i32
  }
  func.func @transform_4(%arg0: i32, %arg1: i32) -> (i32, i32) {
    %c0_i32 = arith.constant 0 : i32
    %c0_i32_0 = arith.constant 0 : i32
    %c0_i32_1 = arith.constant 0 : i32
    return %c0_i32, %c0_i32_0 : i32, i32
  }
  func.func @transform_5(%arg0: i32, %arg1: i32) -> (i32, i32, i32) {
    %c0_i32 = arith.constant 0 : i32
    %c0_i32_0 = arith.constant 0 : i32
    return %arg0, %arg1, %c0_i32 : i32, i32, i32
  }
}

</mosaic_0001>

<bundles_post_ra>
// kernel: tpu_custom_call.1
= control target key start
LH: loop header
LB: loop body
LE: loop exit
PB: predicated region body
PF: predicated region fallthrough
CT: control target
= control target key end

     0   :  { %10 = vsyncpa [#allocation3], 0  ;;  %s926_s0 = inlined_call_operand.hbm [shape: bf16[2,8,128], index: 0, kind: input, shape index: {}]   ;;  %s927_s1 = inlined_call_operand.hbm [shape: bf16[8,128], index: 1, kind: input, shape index: {}]   ;;  %s928_s2 = inlined_call_operand.vmem [shape: bf16[1,128], index: 2, kind: input, shape index: {}]   ;;  %s929_s3 = inlined_call_operand.vmem [shape: f32[1,128], index: 3, kind: input, shape index: {}]   ;;  %s930_s4 = inlined_call_operand.vmem [shape: f32[1,128], index: 4, kind: input, shape index: {}]   ;;  %s931_s5 = inlined_call_operand.hbm [shape: bf16[2,8,128], index: 5, kind: output, shape index: {}]  }
   0x1   :  { %12 = vsyncpa [#allocation3 + $0x1], 0 }
   0x2   :  { %13 = vsyncpa [#allocation6], 0 }
   0x3   :  { %14 = vsyncpa [#allocation4], 0 }
   0x4   :  { %16 = vsyncpa [#allocation4 + $0x1], 0  ;;  %s697_s18 = smov 0   ;;  %s699_s19 = smov 0  }
   0x5   :  { %s701_s20 = smov 0   ;;  %s703_s21 = smov 0  }
   0x6   :  { %s705_s22 = smov 0   ;;  %s707_s23 = smov 0  }
   0x7 LB: > { %s426_s24 = sadd.s32 4294967295, %s662_s23   ;;  %s427_s25 = sadd.s32 4294967294, %s662_s23   ;;  %s662_s23 = sphi %s707_s23, %s22_s23   ;;  %s658_s22 = sphi %s705_s22, %s956_s22   ;;  %s654_s21 = sphi %s703_s21, %s955_s21   ;;  %s650_s20 = sphi %s701_s20, %s954_s20   ;;  %s646_s19 = sphi %s699_s19, %s953_s19   ;;  %s642_s18 = sphi %s697_s18, %s952_s18  }
   0x8   : > { %p56_p0 = scmp.ne.s32.totalorder %s646_s19, %s642_s18  ;;  %p731_p1 = scmp.eq.s32.totalorder %s426_s24, 0 }
   0x9   : > { %p735_p2 = scmp.eq.s32.totalorder %s426_s24, 1  ;;  %p177_p3 = scmp.eq.s32.totalorder %s427_s25, 1 }
   0xa   : > { %s936_s26 = scalar_select %p731_p1, 1, 0 }
   0xb   : > { %s937_s27 = scalar_select %p735_p2, 1, 0 }
   0xc   : > { %p741_p4 = por %p731_p1, %p56_p0  ;;  %p428_p5 = scmp.ge.s32.totalorder %s662_s23, 1 }
   0xd   : > { %p746_p6 = por %p177_p3, %p56_p0  ;;  %p184_p7 = scmp.lt.s32.totalorder %s662_s23, 3 }
   0xe   : > { %s938_s28 = scalar_select %p741_p4, 1, 0 }
   0xf   : > { %s939_s29 = scalar_select %p746_p6, 1, 0 }
  0x10   : > { %p751_p8 = pnand %p428_p5, %p184_p7  ;;  %s664_s6 = smov [#allocation5]  }
  0x11   : > { %s199_s7 = sshll.u32 %s664_s6, 4  ;;  %s34_s9 = sadd.s32 1, %s658_s22  ;;  %s200_s7 = int_to_ptr.vmem [resolvable:$true] %s199_s7 }
  0x12   : > { %s940_s30 = scalar_select %p751_p8, 1, 0 }
  0x13   : > { %p451_p10 = pneg %p751_p8  ;;  %s43_s10 = sadd.s32 1, %s650_s20 }
  0x14   : > { %p766_p12 = scmp.ge.s32.totalorder %s34_s9, 2  ;;  %s518_s14 = scalar_lea.hbm %s927_s1, 64 }
  0x15   : > { %p760_p11 = pnand %p451_p10, %p731_p1  ;;  %p519_p13 = scmp.ne.s32.totalorder %s927_s1, %s518_s14 }
  0x16   : > { %s942_s11 = scalar_select %p766_p12, 1, 0 }
  0x17   : > { %p520_p0 = pneg %p760_p11  ;;  %p525_p7 = scmp.lt.u32.totalorder %s518_s14, %s927_s1 }
  0x19   : > { %p521_p3 = pnand %p520_p0, %p519_p13 }
  0x1b   : > { %p522_p5 = pneg %p521_p3 }
  0x1d   : > { %p527_p10 = pnand %p525_p7, %p522_p5 }
  0x1f   : > { %530 = shalt.err (!%p527_p10)
}
  0x20   : > { %s531_s25 = scalar_lea.vmem %s200_s7, 64  ;;  %p539_p4 = scmp.lt.s32.totalorder %s200_s7, %s200_s7 }
  0x21   : > { %p532_p9 = scmp.ne.s32.totalorder %s200_s7, %s531_s25  ;;  %p540_p8 = scmp.lt.s32.totalorder %s531_s25, %s531_s25 }
  0x23   : > { %p534_p6 = pnand %p532_p9, %p520_p0  ;;  %p541_p2 = por %p540_p8, %p539_p4 }
  0x25   : > { %p535_p1 = pneg %p534_p6 }
  0x27   : > { %p542_p12 = pnand %p541_p2, %p535_p1 }
  0x29   : > { %545 = shalt.err (!%p542_p12)
}
  0x2a   : > { %454 = dma.hbm_to_vmem [thread:$0]  (!%p760_p11), %s927_s1, 64, %s200_s7, [#allocation6]  }
  0x2b   : > { %p943_p4 = scmp.ne.s32.totalorder %s942_s11, 0  ;;  %p50_p1 = scmp.ne.s32.totalorder %s650_s20, %s646_s19 }
  0x2c   : > { %p51_p2 = scmp.eq.s32.totalorder %s662_s23, 0  ;;  %p464_p6 = scmp.lt.s32.totalorder %s662_s23, 2 }
  0x2d   : > { %s958_s9 = smov (%p943_p4, %s34_s9), 0  ;;  %p944_p12 = scmp.ne.s32.totalorder %s937_s27, 0 }
  0x2e   : > { %s38_s8 = ssub.s32 %s658_s22, %s958_s9  ;;  %p52_p9 = por %p51_p2, %p50_p1 }
  0x2f   : > { %p41_p8 = scmp.eq.s32.totalorder %s38_s8, 0  ;;  %p798_p13 = por %p944_p12, %p50_p1 }
  0x30   : > { %s219_s14 = sand.u32 1, %s650_s20   ;;  %s432_s11 = sshll.u32 %s658_s22, 6 }
  0x31   : > { %s806_s15 = scalar_select %p41_p8, %s650_s20, %s43_s10  }
  0x32   : > { %s431_s7 = sshll.u32 %s219_s14, 2  ;;  %s812_s24 = scalar_lea.hbm %s926_s0, %s432_s11 }
  0x33   : > { %s223_s27 = scalar_lea.vmem [#allocation2], %s431_s7  ;;  %p816_p11 = pnand %p464_p6, %p52_p9 }
  0x34   : > { %s231_s25 = sshll.u32 %s223_s27, 4  ;;  %s220_s10 = scalar_lea.sflag [#allocation3], %s219_s14  ;;  %s814_s25 = int_to_ptr.vmem [resolvable:$true] %s231_s25 }
  0x35   : > { %s546_s12 = scalar_lea.hbm %s812_s24, 64  ;;  %p548_p3 = pneg %p816_p11 }
  0x36   : > { %p547_p0 = scmp.ne.s32.totalorder %s812_s24, %s546_s12  ;;  %s551_s11 = scalar_lea.hbm %s926_s0, 128 }
  0x37   : > { %p552_p10 = scmp.lt.u32.totalorder %s812_s24, %s926_s0  ;;  %p553_p4 = scmp.lt.u32.totalorder %s551_s11, %s546_s12 }
  0x38   : > { %p549_p5 = pnand %p548_p3, %p547_p0  ;;  %p555_p2 = scmp.lt.u32.totalorder %s546_s12, %s812_s24 }
  0x39   : > { %p554_p1 = por %p553_p4, %p552_p10 }
  0x3a   : > { %p550_p7 = pneg %p549_p5 }
  0x3b   : > { %p556_p6 = por %p555_p2, %p554_p1 }
  0x3d   : > { %p557_p8 = pnand %p556_p6, %p550_p7 }
  0x3f   : > { %560 = shalt.err (!%p557_p8)
}
  0x40   : > { %s561_s14 = scalar_lea.vmem %s814_s25, 64  ;;  %s665_s27 = smov [#allocation2]  }
  0x41   : > { %p562_p9 = scmp.ne.s32.totalorder %s814_s25, %s561_s14  ;;  %s566_s8 = sshll.u32 %s665_s27, 4  ;;  %s567_s8 = int_to_ptr.vmem [resolvable:$false] %s566_s8 }
  0x42   : > { %s568_s7 = scalar_lea.vmem %s567_s8, 128  ;;  %p569_p5 = scmp.lt.s32.totalorder %s814_s25, %s567_s8 }
  0x43   : > { %p564_p12 = pnand %p562_p9, %p548_p3  ;;  %p570_p10 = scmp.lt.s32.totalorder %s568_s7, %s561_s14 }
  0x45   : > { %p565_p0 = pneg %p564_p12  ;;  %p571_p4 = por %p570_p10, %p569_p5 }
  0x47   : > { %p572_p1 = pnand %p571_p4, %p565_p0 }
  0x49   : > { %575 = shalt.err (!%p572_p1)
}
  0x4a   : > { %458 = dma.hbm_to_vmem [thread:$0]  (!%p816_p11), %s812_s24, 64, %s814_s25, %s220_s10  }
  0x4b   : > { %p947_p7 = scmp.ne.s32.totalorder %s940_s30, 0 }
  0x4c   : > { %s848_s12 = sand.u32 (!%p947_p7), 1, %s646_s19   ;;  %p948_p3 = scmp.ne.s32.totalorder (!%p947_p7), %s938_s28, 0 }
  0x4d   : > { %240 = sbr.rel (%p947_p7) target bundleno = 425 (0x1a9), region = 40  ;;  %s434_s11 = sshll.u32 (!%p947_p7), %s848_s12, 2 }
  0x4e   : > { %s243_s16 = scalar_lea.sflag (!%p947_p7), [#allocation3], %s848_s12  ;;  %s246_s17 = scalar_lea.vmem (!%p947_p7), [#allocation2], %s434_s11 }
  0x54   : > { %629 = dma.done.wait (%p948_p3), %s243_s16, 64  }
  0x55   : > { %631 = vsyncadd (%p948_p3), %s243_s16, 4294967232  ;;  %p949_p11 = scmp.ne.s32.totalorder %s936_s26, 0 }
  0x57   : > { %633 = dma.done.wait (%p949_p11), [#allocation6], 64  }
  0x58   : > { %635 = vsyncadd (%p949_p11), [#allocation6], 4294967232  ;;  %v284_v0 = vlaneseq  ;;  %v277_v3 = vld [vmem:[%s246_s17] sm:$0xf]  ;;  %v279_v4 = vld [vmem:[#allocation5] sm:$0xf] }
  0x59   : > { %v282_v5 = vld [vmem:[%s928_s2] sm:$0x1]  ;;  %v278_v6 = vunpack.c.l.bf16 %v277_v3  ;;  %v280_v7 = vunpack.c.l.bf16 %v279_v4  ;;  %s440_s10 = sshll.u32 %s654_s21, 6  ;;  %s276_s14 = scalar_lea.vmem [#allocation7], %s434_s11 }
  0x5a   : > { %v285_v1 = vshrl.u32 %v284_v0, 7  ;;  %v283_v8 = vunpack.c.l.bf16 %v282_v5  ;;  %v437_v20 = vld [vmem:[%s929_s3] ss:$0 sm:$0xff]  ;;  %s334_s27 = sshll.u32 %s276_s14, 4  ;;  %s877_s16 = scalar_lea.hbm %s931_s5, %s440_s10  ;;  %s879_s27 = int_to_ptr.vmem [resolvable:$true] %s334_s27 }
  0x5b   : > { %v281_v9 = vadd.f32 %v280_v7, %v278_v6  ;;  %v438_v22 = vld [vmem:[%s930_s4] ss:$0 sm:$0xff]  ;;  %s320_s17 = scalar_lea.sflag [#allocation4], %s848_s12  ;;  %s576_s30 = scalar_lea.vmem %s879_s27, 64 }
  0x5c   : > { %v286_v2 = vsub.s32 0, %v285_v1  ;;  %p577_p2 = scmp.ne.s32.totalorder %s879_s27, %s576_s30  ;;  %s666_s21 = smov [#allocation7]  }
  0x5d   : > { %s580_s11 = sshll.u32 %s666_s21, 4  ;;  %s581_s11 = int_to_ptr.vmem [resolvable:$false] %s580_s11 }
  0x5e   : > { %v287_v10 = vrot.slane %v283_v8, %v286_v2  ;;  %p578_p6 = pnand %p577_p2, %p798_p13  ;;  %s582_s24 = scalar_lea.vmem %s581_s11, 128 }
  0x5f   : > { %p583_p9 = scmp.lt.s32.totalorder %s879_s27, %s581_s11  ;;  %p584_p12 = scmp.lt.s32.totalorder %s582_s24, %s576_s30 }
  0x60   : > { %v288_v11 = vadd.f32 %v287_v10, %v281_v9  ;;  %p579_p8 = pneg %p578_p6 }
  0x61   : > { %p585_p0 = por %p584_p12, %p583_p9 }
  0x62   : > { %289 = vadd.xlane.f32.xlu0 %v288_v11 }
  0x63   : > { %p586_p5 = pnand %p585_p0, %p579_p8 }
  0xef   : > { %v290_v12 = vpop.xlane.xlu0 %289 }
  0xf0   : > { %v292_v13 = vmul.f32 0.0078125, %v290_v12 }
  0xf2   : > { %v293_v14 = vsub.f32 %v288_v11, %v292_v13 }
  0xf4   : > { %v294_v15 = vmul.f32 %v293_v14, %v293_v14 }
  0xf6   : > { %295 = vadd.xlane.f32.xlu0 %v294_v15 }
 0x183   : > { %v296_v16 = vpop.xlane.xlu0 %295 }
 0x184   : > { %v297_v17 = vmul.f32 0.0078125, %v296_v16 }
 0x186   : > { %v298_v18 = vadd.f32 1e-12, %v297_v17 }
 0x188   : > { %516 = vrsqrt.f32 %v298_v18 }
 0x192   : > { %v517_v19 = vpop.eup %516 }
 0x193   : > { %v300_v21 = vmul.f32 %v517_v19, %v293_v14 }
 0x195   : > { %v308_v23 = vmul.f32 %v437_v20, %v300_v21 }
 0x197   : > { %v316_v24 = vadd.f32 %v438_v22, %v308_v23 }
 0x199   : > { %v317_v25 = vpack.c.bf16 %v316_v24, %v316_v24 }
 0x19b   : > { %318 = vst [vmem:[%s276_s14] sm:$0xf] %v317_v25 }
 0x19c   : > { %589 = shalt.err (!%p586_p5)
}
 0x19d   : > { %s590_s12 = scalar_lea.hbm %s877_s16, 64  ;;  %s594_s25 = scalar_lea.hbm %s931_s5, 128 }
 0x19e   : > { %p591_p10 = scmp.ne.s32.totalorder %s877_s16, %s590_s12  ;;  %p595_p7 = scmp.lt.u32.totalorder %s877_s16, %s931_s5 }
 0x19f   : > { %p596_p3 = scmp.lt.u32.totalorder %s594_s25, %s590_s12  ;;  %p598_p2 = scmp.lt.u32.totalorder %s590_s12, %s877_s16 }
 0x1a0   : > { %p592_p4 = pnand %p591_p10, %p798_p13 }
 0x1a1   : > { %p597_p11 = por %p596_p3, %p595_p7 }
 0x1a2   : > { %p593_p1 = pneg %p592_p4 }
 0x1a3   : > { %p599_p6 = por %p598_p2, %p597_p11 }
 0x1a5   : > { %p600_p8 = pnand %p599_p6, %p593_p1 }
 0x1a7   : > { %603 = shalt.err (!%p600_p8)
}
 0x1a8   : > { %449 = dma.vmem_to_hbm [thread:$0]  (%p798_p13), %s879_s27, 64, %s877_s16, %s320_s17  }
 0x1a9 PF: > { %s346_s14 = sand.u32 1, %s642_s18   ;;  %p950_p9 = scmp.ne.s32.totalorder %s939_s29, 0 }
 0x1aa   : > { %p951_p12 = scmp.ge.s32.totalorder %s662_s23, 2  ;;  %s347_s8 = scalar_lea.sflag [#allocation4], %s346_s14 }
 0x1ac   : > { %p460_p0 = pnand %p951_p12, %p950_p9 }
 0x1ae   : > { %637 = dma.done.wait (!%p460_p0), %s347_s8, 64  }
 0x1af   : > { %639 = vsyncadd (!%p460_p0), %s347_s8, 4294967232  ;;  %s22_s23 = sadd.s32 1, %s662_s23   ;;  %s952_s18 = smov %s646_s19 }
 0x1b0   : > { %p19_p5 = scmp.ge.s32.totalorder %s22_s23, 4   ;;  %s953_s19 = smov %s650_s20 }
 0x1b1   : > { %s954_s20 = smov %s806_s15  ;;  %s955_s21 = smov %s658_s22 }
 0x1b2   : > { %s956_s22 = smov %s958_s9  ;;  %21 = sbr.rel (!%p19_p5) target bundleno = 7 (0x7), region = 90 }
 0x1b9   :  { %352 = vsyncpa [#allocation3], 1 }
 0x1ba   :  { %354 = vsyncpa [#allocation3 + $0x1], 1 }
 0x1bb   :  { %355 = vsyncpa [#allocation6], 1 }
 0x1bc   :  { %356 = vsyncpa [#allocation4], 1 }
 0x1bd   :  { %358 = vsyncpa [#allocation4 + $0x1], 1 }

</bundles_post_ra>
